<compile_context>
chip_gen: v6e
topology: v6e:2x2x1
jax: 0.10.0
libtpu: 0.0.40
codegen_flags: <defaults>
</compile_context>

<pallas_src>
import jax
import jax.numpy as jnp
from jax.experimental import pallas as pl
from jax.experimental.pallas import tpu as pltpu

EPS = 1e-5
NEG_SLOPE = 0.2
DROP_P = 0.2
LANE = 128


def _round_up(n, m):
    return ((n + m - 1) // m) * m


def _leaky_relu(x):
    # identical to where(x>0, x, a*x) for 0 < a < 1; lowers to a single vmax
    return jnp.maximum(x, NEG_SLOPE * x)


def _batchnorm_train(h, gamma, beta):
    # training-mode BatchNorm1d: stats over the batch axis (axis 0),
    # biased variance, per-feature affine.  Centered tensor hoisted once.
    mean = jnp.mean(h, axis=0, keepdims=True)
    c = h - mean
    var = jnp.mean(c * c, axis=0, keepdims=True)
    return gamma * (c * jax.lax.rsqrt(var + EPS)) + beta


def data_discriminator_kernel(
    x_ref,
    w1_ref, g1_ref, be1_ref,
    w2_ref, g2_ref, be2_ref,
    mask_ref,
    w3_ref, b3_ref,
    out_ref,
):
    x = x_ref[...]

    # layer 1: Linear -> BN -> LeakyReLU  (b1 dropped: cancels in training BN)
    h = jnp.dot(x, w1_ref[...], preferred_element_type=jnp.float32)
    h = _batchnorm_train(h, g1_ref[...], be1_ref[...])
    h = _leaky_relu(h)

    # layer 2: Linear -> BN -> LeakyReLU  (b2 dropped: cancels in training BN)
    h = jnp.dot(h, w2_ref[...], preferred_element_type=jnp.float32)
    h = _batchnorm_train(h, g2_ref[...], be2_ref[...])
    h = _leaky_relu(h)

    # dropout (training mode): pre-scaled keep mask supplied by the wrapper
    h = h * mask_ref[...]

    # layer 3: Linear(H -> 1), output lane-padded to 128 (sliced in wrapper)
    out = jnp.dot(h, w3_ref[...], preferred_element_type=jnp.float32) + b3_ref[...]
    out_ref[...] = out.astype(out_ref.dtype)


def _pad2(a, rows, cols):
    r, c = a.shape
    return jnp.pad(a, ((0, rows - r), (0, cols - c)))


def data_discriminator(x, params, dropout_mask):
    """x: (N, data_size) f32.  params: dict (see init_params).
    dropout_mask: (N, hidden_size) pre-scaled keep mask with values {0, 1/(1-p)}."""
    n, d = x.shape
    h = params["w1"].shape[1]

    dp = _round_up(d, LANE)
    hp = _round_up(h, LANE)
    lp = LANE  # output feature dim (1) padded to one full lane group

    # Zero-pad every feature axis to lane multiples; padded hidden columns stay
    # exactly zero through the whole network, so the sliced output is exact.
    args = (
        _pad2(x, n, dp),
        _pad2(params["w1"], dp, hp),
        _pad2(params["g1"], 1, hp),
        _pad2(params["be1"], 1, hp),
        _pad2(params["w2"], hp, hp),
        _pad2(params["g2"], 1, hp),
        _pad2(params["be2"], 1, hp),
        _pad2(dropout_mask, n, hp),
        _pad2(params["w3"], hp, lp),
        _pad2(params["b3"], 1, lp),
    )

    # Whole (padded) problem fits comfortably in VMEM: single grid point with
    # full-array VMEM blocks (training-mode BN couples all batch rows, so the
    # batch must live in one block).
    vmem = pl.BlockSpec(memory_space=pltpu.MemorySpace.VMEM)

    # TODO(synk): for realistic discriminator sizes (large N), switch to a
    # batch-tiled two-pass BN (accumulate per-feature sum / sum-of-squares over
    # batch tiles) and re-budget VMEM per generation (64 MiB total on v7x).
    out_p = pl.pallas_call(
        data_discriminator_kernel,
        grid=(),
        in_specs=[vmem] * len(args),
        out_specs=vmem,
        out_shape=jax.ShapeDtypeStruct((n, lp), jnp.float32),
        compiler_params=pltpu.CompilerParams(vmem_limit_bytes=32 * 1024 * 1024),
    )(*args)

    return out_p[:, :1]


def init_params(key, data_size, hidden_size):
    ks = jax.random.split(key, 6)

    def linear(kw, kb, fan_in, fan_out):
        # PyTorch-style uniform(-1/sqrt(fan_in), 1/sqrt(fan_in)) init;
        # weights stored transposed vs. PyTorch, i.e. (in, out).
        bound = 1.0 / jnp.sqrt(jnp.float32(fan_in))
        w = jax.random.uniform(kw, (fan_in, fan_out), jnp.float32, -bound, bound)
        b = jax.random.uniform(kb, (1, fan_out), jnp.float32, -bound, bound)
        return w, b

    w1, b1 = linear(ks[0], ks[1], data_size, hidden_size)
    w2, b2 = linear(ks[2], ks[3], hidden_size, hidden_size)
    w3, b3 = linear(ks[4], ks[5], hidden_size, 1)

    return {
        # b1/b2 are kept for reference fidelity but NOT passed to the kernel:
        # a pre-BN bias cancels exactly in training-mode BatchNorm.
        "w1": w1, "b1": b1,
        "g1": jnp.ones((1, hidden_size), jnp.float32),
        "be1": jnp.zeros((1, hidden_size), jnp.float32),
        "w2": w2, "b2": b2,
        "g2": jnp.ones((1, hidden_size), jnp.float32),
        "be2": jnp.zeros((1, hidden_size), jnp.float32),
        "w3": w3, "b3": b3,
    }


def _reference(x, p, mask):
    # pure-JAX reference of the same forward (module in training state)
    def bn(h):
        m = jnp.mean(h, axis=0, keepdims=True)
        v = jnp.mean((h - m) ** 2, axis=0, keepdims=True)
        return (h - m) / jnp.sqrt(v + EPS)

    def lrelu(h):
        return jnp.where(h > 0, h, NEG_SLOPE * h)

    h = x @ p["w1"] + p["b1"]
    h = lrelu(p["g1"] * bn(h) + p["be1"])
    h = h @ p["w2"] + p["b2"]
    h = lrelu(p["g2"] * bn(h) + p["be2"])
    h = h * mask
    return h @ p["w3"] + p["b3"]


if __name__ == "__main__":
    batch, data_size, hidden_size = 8, 16, 32

    key = jax.random.PRNGKey(0)
    kx, kp, km = jax.random.split(key, 3)
    x = jax.random.normal(kx, (batch, data_size), jnp.float32)
    params = init_params(kp, data_size, hidden_size)

    # training-mode dropout: pre-scaled keep mask shared by kernel and reference
    keep = jax.random.bernoulli(km, 1.0 - DROP_P, (batch, hidden_size))
    dropout_mask = keep.astype(jnp.float32) / (1.0 - DROP_P)

    out = data_discriminator(x, params, dropout_mask)
    out = jax.block_until_ready(out)

    ref = _reference(x, params, dropout_mask)
    assert out.shape == (batch, 1)
    assert jnp.allclose(out, ref, atol=1e-4, rtol=1e-4)

    print("KERNEL_OK")
</pallas_src>

<mosaic_0001>
module attributes {stable_mosaic.version = 11 : i64} {
  func.func @data_discriminator_kernel(%arg0: memref<8x128xf32, #tpu.memory_space<vmem>>, %arg1: memref<128x128xf32, #tpu.memory_space<vmem>>, %arg2: memref<1x128xf32, #tpu.memory_space<vmem>>, %arg3: memref<1x128xf32, #tpu.memory_space<vmem>>, %arg4: memref<128x128xf32, #tpu.memory_space<vmem>>, %arg5: memref<1x128xf32, #tpu.memory_space<vmem>>, %arg6: memref<1x128xf32, #tpu.memory_space<vmem>>, %arg7: memref<8x128xf32, #tpu.memory_space<vmem>>, %arg8: memref<128x128xf32, #tpu.memory_space<vmem>>, %arg9: memref<1x128xf32, #tpu.memory_space<vmem>>, %arg10: memref<8x128xf32, #tpu.memory_space<vmem>>) attributes {dimension_semantics = [], scalar_prefetch = 0 : i64, scratch_operands = 0 : i64, tpu.core_type = #tpu.core_type<tc>} {
    %c0 = arith.constant 0 : index
    %c0_0 = arith.constant 0 : index
    %0 = vector.load %arg0[%c0, %c0_0] : memref<8x128xf32, #tpu.memory_space<vmem>>, vector<8x128xf32>
    %c0_1 = arith.constant 0 : index
    %c0_2 = arith.constant 0 : index
    %1 = vector.load %arg1[%c0_1, %c0_2] : memref<128x128xf32, #tpu.memory_space<vmem>>, vector<128x128xf32>
    %cst = arith.constant dense<0.000000e+00> : vector<8x128xf32>
    %2 = tpu.matmul %0, %1, %cst {dimension_numbers = #tpu.dot_dimension_numbers<[1], [0], [0], [1], [0, 0, 1, 1], [], []>} : vector<8x128xf32>, vector<128x128xf32>, vector<8x128xf32> -> vector<8x128xf32>
    %c0_3 = arith.constant 0 : index
    %c0_4 = arith.constant 0 : index
    %3 = vector.load %arg2[%c0_3, %c0_4] : memref<1x128xf32, #tpu.memory_space<vmem>>, vector<1x128xf32>
    %c0_5 = arith.constant 0 : index
    %c0_6 = arith.constant 0 : index
    %4 = vector.load %arg3[%c0_5, %c0_6] : memref<1x128xf32, #tpu.memory_space<vmem>>, vector<1x128xf32>
    %cst_7 = arith.constant dense<0.000000e+00> : vector<128xf32>
    %5 = vector.multi_reduction <add>, %2, %cst_7 [0] : vector<8x128xf32> to vector<128xf32>
    %6 = vector.shape_cast %5 : vector<128xf32> to vector<1x128xf32>
    %cst_8 = arith.constant 8.000000e+00 : f32
    %7 = vector.broadcast %cst_8 : f32 to vector<1x128xf32>
    %8 = arith.divf %6, %7 : vector<1x128xf32>
    %9 = vector.broadcast %8 : vector<1x128xf32> to vector<8x128xf32>
    %10 = arith.subf %2, %9 : vector<8x128xf32>
    %11 = arith.mulf %10, %10 : vector<8x128xf32>
    %cst_9 = arith.constant dense<0.000000e+00> : vector<128xf32>
    %12 = vector.multi_reduction <add>, %11, %cst_9 [0] : vector<8x128xf32> to vector<128xf32>
    %13 = vector.shape_cast %12 : vector<128xf32> to vector<1x128xf32>
    %cst_10 = arith.constant 8.000000e+00 : f32
    %14 = vector.broadcast %cst_10 : f32 to vector<1x128xf32>
    %15 = arith.divf %13, %14 : vector<1x128xf32>
    %cst_11 = arith.constant 9.99999974E-6 : f32
    %16 = vector.broadcast %cst_11 : f32 to vector<1x128xf32>
    %17 = arith.addf %15, %16 : vector<1x128xf32>
    %18 = math.rsqrt %17 : vector<1x128xf32>
    %19 = vector.broadcast %18 : vector<1x128xf32> to vector<8x128xf32>
    %20 = arith.mulf %10, %19 : vector<8x128xf32>
    %21 = vector.broadcast %3 : vector<1x128xf32> to vector<8x128xf32>
    %22 = arith.mulf %21, %20 : vector<8x128xf32>
    %23 = vector.broadcast %4 : vector<1x128xf32> to vector<8x128xf32>
    %24 = arith.addf %22, %23 : vector<8x128xf32>
    %cst_12 = arith.constant 2.000000e-01 : f32
    %25 = vector.broadcast %cst_12 : f32 to vector<8x128xf32>
    %26 = arith.mulf %25, %24 : vector<8x128xf32>
    %27 = arith.maximumf %24, %26 : vector<8x128xf32>
    %c0_13 = arith.constant 0 : index
    %c0_14 = arith.constant 0 : index
    %28 = vector.load %arg4[%c0_13, %c0_14] : memref<128x128xf32, #tpu.memory_space<vmem>>, vector<128x128xf32>
    %cst_15 = arith.constant dense<0.000000e+00> : vector<8x128xf32>
    %29 = tpu.matmul %27, %28, %cst_15 {dimension_numbers = #tpu.dot_dimension_numbers<[1], [0], [0], [1], [0, 0, 1, 1], [], []>} : vector<8x128xf32>, vector<128x128xf32>, vector<8x128xf32> -> vector<8x128xf32>
    %c0_16 = arith.constant 0 : index
    %c0_17 = arith.constant 0 : index
    %30 = vector.load %arg5[%c0_16, %c0_17] : memref<1x128xf32, #tpu.memory_space<vmem>>, vector<1x128xf32>
    %c0_18 = arith.constant 0 : index
    %c0_19 = arith.constant 0 : index
    %31 = vector.load %arg6[%c0_18, %c0_19] : memref<1x128xf32, #tpu.memory_space<vmem>>, vector<1x128xf32>
    %cst_20 = arith.constant dense<0.000000e+00> : vector<128xf32>
    %32 = vector.multi_reduction <add>, %29, %cst_20 [0] : vector<8x128xf32> to vector<128xf32>
    %33 = vector.shape_cast %32 : vector<128xf32> to vector<1x128xf32>
    %cst_21 = arith.constant 8.000000e+00 : f32
    %34 = vector.broadcast %cst_21 : f32 to vector<1x128xf32>
    %35 = arith.divf %33, %34 : vector<1x128xf32>
    %36 = vector.broadcast %35 : vector<1x128xf32> to vector<8x128xf32>
    %37 = arith.subf %29, %36 : vector<8x128xf32>
    %38 = arith.mulf %37, %37 : vector<8x128xf32>
    %cst_22 = arith.constant dense<0.000000e+00> : vector<128xf32>
    %39 = vector.multi_reduction <add>, %38, %cst_22 [0] : vector<8x128xf32> to vector<128xf32>
    %40 = vector.shape_cast %39 : vector<128xf32> to vector<1x128xf32>
    %cst_23 = arith.constant 8.000000e+00 : f32
    %41 = vector.broadcast %cst_23 : f32 to vector<1x128xf32>
    %42 = arith.divf %40, %41 : vector<1x128xf32>
    %cst_24 = arith.constant 9.99999974E-6 : f32
    %43 = vector.broadcast %cst_24 : f32 to vector<1x128xf32>
    %44 = arith.addf %42, %43 : vector<1x128xf32>
    %45 = math.rsqrt %44 : vector<1x128xf32>
    %46 = vector.broadcast %45 : vector<1x128xf32> to vector<8x128xf32>
    %47 = arith.mulf %37, %46 : vector<8x128xf32>
    %48 = vector.broadcast %30 : vector<1x128xf32> to vector<8x128xf32>
    %49 = arith.mulf %48, %47 : vector<8x128xf32>
    %50 = vector.broadcast %31 : vector<1x128xf32> to vector<8x128xf32>
    %51 = arith.addf %49, %50 : vector<8x128xf32>
    %cst_25 = arith.constant 2.000000e-01 : f32
    %52 = vector.broadcast %cst_25 : f32 to vector<8x128xf32>
    %53 = arith.mulf %52, %51 : vector<8x128xf32>
    %54 = arith.maximumf %51, %53 : vector<8x128xf32>
    %c0_26 = arith.constant 0 : index
    %c0_27 = arith.constant 0 : index
    %55 = vector.load %arg7[%c0_26, %c0_27] : memref<8x128xf32, #tpu.memory_space<vmem>>, vector<8x128xf32>
    %56 = arith.mulf %54, %55 : vector<8x128xf32>
    %c0_28 = arith.constant 0 : index
    %c0_29 = arith.constant 0 : index
    %57 = vector.load %arg8[%c0_28, %c0_29] : memref<128x128xf32, #tpu.memory_space<vmem>>, vector<128x128xf32>
    %cst_30 = arith.constant dense<0.000000e+00> : vector<8x128xf32>
    %58 = tpu.matmul %56, %57, %cst_30 {dimension_numbers = #tpu.dot_dimension_numbers<[1], [0], [0], [1], [0, 0, 1, 1], [], []>} : vector<8x128xf32>, vector<128x128xf32>, vector<8x128xf32> -> vector<8x128xf32>
    %c0_31 = arith.constant 0 : index
    %c0_32 = arith.constant 0 : index
    %59 = vector.load %arg9[%c0_31, %c0_32] : memref<1x128xf32, #tpu.memory_space<vmem>>, vector<1x128xf32>
    %60 = vector.broadcast %59 : vector<1x128xf32> to vector<8x128xf32>
    %61 = arith.addf %58, %60 : vector<8x128xf32>
    %c0_33 = arith.constant 0 : index
    %c0_34 = arith.constant 0 : index
    %62 = vector.load %arg10[%c0_33, %c0_34] : memref<8x128xf32, #tpu.memory_space<vmem>>, vector<8x128xf32>
    tpu.vector_store %arg10[%c0_33, %c0_34], %61 {strides = array<i32>} : memref<8x128xf32, #tpu.memory_space<vmem>>, vector<8x128xf32>,
    return
  }
}

</mosaic_0001>

<bundles_post_ra>
// kernel: tpu_custom_call.1
= control target key start
LH: loop header
LB: loop body
LE: loop exit
PB: predicated region body
PF: predicated region fallthrough
CT: control target
= control target key end

     0   :  { %15 = vsyncpa [#allocation3], 0  ;;  %s892_s0 = inlined_call_operand.hbm [shape: f32[8,128], index: 0, kind: input, shape index: {}]   ;;  %s893_s1 = inlined_call_operand.hbm [shape: f32[128,128], index: 1, kind: input, shape index: {}]   ;;  %s894_s2 = inlined_call_operand.vmem [shape: f32[1,128], index: 2, kind: input, shape index: {}]   ;;  %s895_s3 = inlined_call_operand.vmem [shape: f32[1,128], index: 3, kind: input, shape index: {}]   ;;  %s896_s4 = inlined_call_operand.hbm [shape: f32[128,128], index: 4, kind: input, shape index: {}]   ;;  %s897_s5 = inlined_call_operand.vmem [shape: f32[1,128], index: 5, kind: input, shape index: {}]   ;;  %s898_s6 = inlined_call_operand.vmem [shape: f32[1,128], index: 6, kind: input, shape index: {}]   ;;  %s899_s7 = inlined_call_operand.vmem [shape: f32[8,128], index: 7, kind: input, shape index: {}]   ;;  %s900_s8 = inlined_call_operand.hbm [shape: f32[128,128], index: 8, kind: input, shape index: {}]   ;;  %s901_s9 = inlined_call_operand.vmem [shape: f32[1,128], index: 9, kind: input, shape index: {}]   ;;  %s902_s10 = inlined_call_operand.hbm [shape: f32[8,128], index: 10, kind: output, shape index: {}]  }
   0x1   :  { %16 = vsyncpa [#allocation6], 0 }
   0x2   :  { %17 = vsyncpa [#allocation9], 0 }
   0x3   :  { %18 = vsyncpa [#allocation4], 0  ;;  %s732_s13 = smov [#allocation5]  }
   0x4   :  { %s34_s14 = sshll.u32 %s732_s13, 4  ;;  %s35_s14 = int_to_ptr.vmem [resolvable:$true] %s34_s14 }
   0x5   :  { %s632_s15 = scalar_lea.vmem %s35_s14, 2048  ;;  %p637_p1 = scmp.lt.s32.totalorder %s35_s14, %s35_s14 }
   0x6   :  { %p633_p0 = scmp.ne.s32.totalorder %s35_s14, %s632_s15  ;;  %p638_p2 = scmp.lt.s32.totalorder %s632_s15, %s632_s15 }
   0x8   :  { %p639_p3 = por %p638_p2, %p637_p1 }
   0xa   :  { %p640_p4 = pnand %p639_p3, %p633_p0 }
   0xc   :  { %643 = shalt.err (!%p640_p4)
}
   0xd   :  { %s733_s16 = smov 128   ;;  %s734_s17 = smov 8  }
   0xe   :  { %40 = dma.hbm_to_vmem [thread:$0]  %s893_s1, 2048, %s35_s14, [#allocation6], %s733_s16, %s733_s16, %s734_s17  }
   0xf   :  { %s735_s20 = smov [#allocation2]   ;;  %s736_s22 = smov [#allocation7]  }
  0x10   :  { %s25_s21 = sshll.u32 %s735_s20, 4  ;;  %s50_s23 = sshll.u32 %s736_s22, 4  ;;  %s26_s21 = int_to_ptr.vmem [resolvable:$true] %s25_s21  ;;  %s51_s23 = int_to_ptr.vmem [resolvable:$true] %s50_s23 }
  0x11   :  { %s652_s24 = scalar_lea.vmem %s26_s21, 128  ;;  %p657_p6 = scmp.lt.s32.totalorder %s26_s21, %s26_s21 }
  0x12   :  { %p653_p5 = scmp.ne.s32.totalorder %s26_s21, %s652_s24  ;;  %p658_p7 = scmp.lt.s32.totalorder %s652_s24, %s652_s24 }
  0x14   :  { %p659_p8 = por %p658_p7, %p657_p6 }
  0x16   :  { %p660_p9 = pnand %p659_p8, %p653_p5 }
  0x18   :  { %663 = shalt.err (!%p660_p9)
}
  0x19   :  { %28 = dma.hbm_to_vmem [thread:$0]  %s892_s0, 128, %s26_s21, [#allocation3]  }
  0x1a   :  { %s672_s27 = scalar_lea.vmem %s51_s23, 2048  ;;  %p677_p11 = scmp.lt.s32.totalorder %s51_s23, %s51_s23 }
  0x1b   :  { %p673_p10 = scmp.ne.s32.totalorder %s51_s23, %s672_s27  ;;  %p678_p12 = scmp.lt.s32.totalorder %s672_s27, %s672_s27 }
  0x1d   :  { %p679_p13 = por %p678_p12, %p677_p11 }
  0x1f   :  { %p680_p0 = pnand %p679_p13, %p673_p10 }
  0x21   :  { %683 = shalt.err (!%p680_p0)
}
  0x22   :  { %56 = dma.hbm_to_vmem [thread:$0]  %s896_s4, 2048, %s51_s23, [#allocation6], %s733_s16, %s733_s16, %s734_s17  }
  0x23   :  { %s737_s29 = smov [#allocation8]  }
  0x24   :  { %s68_s30 = sshll.u32 %s737_s29, 4  ;;  %s69_s30 = int_to_ptr.vmem [resolvable:$true] %s68_s30 }
  0x25   :  { %s692_s11 = scalar_lea.vmem %s69_s30, 2048  ;;  %p697_p2 = scmp.lt.s32.totalorder %s69_s30, %s69_s30 }
  0x26   :  { %p693_p1 = scmp.ne.s32.totalorder %s69_s30, %s692_s11  ;;  %p698_p3 = scmp.lt.s32.totalorder %s692_s11, %s692_s11 }
  0x28   :  { %p699_p4 = por %p698_p3, %p697_p2 }
  0x2a   :  { %p700_p5 = pnand %p699_p4, %p693_p1 }
  0x2c   :  { %703 = shalt.err (!%p700_p5)
}
  0x2d   :  { %74 = dma.hbm_to_vmem [thread:$0]  %s900_s8, 2048, %s69_s30, [#allocation9], %s733_s16, %s733_s16, %s734_s17  }
  0x2e   :  { %724 = dma.done.wait [#allocation3], 128  }
  0x2f   :  { %725 = vsyncadd [#allocation3], 4294967168 }
  0x30   :  { %726 = dma.done.wait [#allocation6], 4096  }
  0x31   :  { %727 = vsyncadd [#allocation6], 4294963200 }
  0x32   :  { %728 = dma.done.wait [#allocation9], 2048  }
  0x33   :  { %729 = vsyncadd [#allocation9], 4294965248  ;;  %v738_v0 = vmov 0.0   ;;  %vm739_vm0 = vmmov 0   ;;  %v105_v1 = vld [vmem:[#allocation5 + $0x78] sm:$0xff]  ;;  %v104_v2 = vld [vmem:[#allocation5 + $0x70] sm:$0xff] }
  0x34   :  { %506 = vmatprep.subr.mxu0 %v738_v0  ;;  %538 = vmatprep.mubr.msk.f32.mxu0 %vm739_vm0, %v738_v0  ;;  %v103_v3 = vld [vmem:[#allocation5 + $0x68] sm:$0xff]  ;;  %v102_v4 = vld [vmem:[#allocation5 + $0x60] sm:$0xff]  ;;  %v101_v5 = vld [vmem:[#allocation5 + $0x58] sm:$0xff] }
  0x35   :  { %541 = vmatprep.subr.mxu1 %v738_v0  ;;  %573 = vmatprep.mubr.msk.f32.mxu1 %vm739_vm0, %v738_v0  ;;  %v100_v6 = vld [vmem:[#allocation5 + $0x50] sm:$0xff]  ;;  %v99_v7 = vld [vmem:[#allocation5 + $0x48] sm:$0xff]  ;;  %v98_v8 = vld [vmem:[#allocation5 + $0x40] sm:$0xff] }
  0x36   :  { %507 = vmatpush3.msra.mxu0 %v105_v1  ;;  %v97_v9 = vld [vmem:[#allocation5 + $0x38] sm:$0xff]  ;;  %v96_v10 = vld [vmem:[#allocation5 + $0x30] sm:$0xff]  ;;  %v95_v11 = vld [vmem:[#allocation5 + $0x28] sm:$0xff] }
  0x37   :  { %508 = vmatprep.subr.mxu0 %v738_v0  ;;  %v94_v12 = vld [vmem:[#allocation5 + $0x20] sm:$0xff]  ;;  %v93_v13 = vld [vmem:[#allocation5 + $0x18] sm:$0xff]  ;;  %v92_v14 = vld [vmem:[#allocation5 + $0x10] sm:$0xff] }
  0x38   :  { %509 = vmatpush3.msra.mxu0 %v104_v2  ;;  %v91_v15 = vld [vmem:[#allocation5 + $0x8] sm:$0xff]  ;;  %v90_v16 = vld [vmem:[#allocation5] sm:$0xff]  ;;  %v89_v17 = vld [vmem:[#allocation2] sm:$0xff] }
  0x39   :  { %510 = vmatprep.subr.mxu0 %v738_v0  ;;  %v229_v18 = vld [vmem:[#allocation7 + $0x78] sm:$0xff]  ;;  %v228_v19 = vld [vmem:[#allocation7 + $0x70] sm:$0xff]  ;;  %v227_v20 = vld [vmem:[#allocation7 + $0x68] sm:$0xff] }
  0x3a   :  { %511 = vmatpush3.msra.mxu0 %v103_v3  ;;  %542 = vmatpush3.msra.mxu1 %v229_v18  ;;  %v226_v21 = vld [vmem:[#allocation7 + $0x60] sm:$0xff]  ;;  %v225_v22 = vld [vmem:[#allocation7 + $0x58] sm:$0xff]  ;;  %v224_v23 = vld [vmem:[#allocation7 + $0x50] sm:$0xff] }
  0x3b   :  { %512 = vmatprep.subr.mxu0 %v738_v0  ;;  %543 = vmatprep.subr.mxu1 %v738_v0  ;;  %v223_v24 = vld [vmem:[#allocation7 + $0x48] sm:$0xff]  ;;  %v222_v25 = vld [vmem:[#allocation7 + $0x40] sm:$0xff]  ;;  %v221_v26 = vld [vmem:[#allocation7 + $0x38] sm:$0xff] }
  0x3c   :  { %513 = vmatpush3.msra.mxu0 %v102_v4  ;;  %544 = vmatpush3.msra.mxu1 %v228_v19  ;;  %v220_v27 = vld [vmem:[#allocation7 + $0x30] sm:$0xff]  ;;  %v219_v28 = vld [vmem:[#allocation7 + $0x28] sm:$0xff]  ;;  %v218_v29 = vld [vmem:[#allocation7 + $0x20] sm:$0xff] }
  0x3d   :  { %514 = vmatprep.subr.mxu0 %v738_v0  ;;  %545 = vmatprep.subr.mxu1 %v738_v0  ;;  %v217_v30 = vld [vmem:[#allocation7 + $0x18] sm:$0xff]  ;;  %v216_v31 = vld [vmem:[#allocation7 + $0x10] sm:$0xff]  ;;  %v215_v32 = vld [vmem:[#allocation7 + $0x8] sm:$0xff] }
  0x3e   :  { %515 = vmatpush3.msra.mxu0 %v101_v5  ;;  %546 = vmatpush3.msra.mxu1 %v227_v20  ;;  %v214_v33 = vld [vmem:[#allocation7] sm:$0xff]  ;;  %v450_v54 = vld [vmem:[%s894_s2] ss:$0 sm:$0xff]  ;;  %v353_v62 = vld [vmem:[#allocation8 + $0x70] sm:$0xff] }
  0x3f   :  { %516 = vmatprep.subr.mxu0 %v738_v0  ;;  %547 = vmatprep.subr.mxu1 %v738_v0  ;;  %v451_v56 = vld [vmem:[%s895_s3] ss:$0 sm:$0xff]  ;;  %v352_v63 = vld [vmem:[#allocation8 + $0x68] sm:$0xff]  ;;  %v351_v1 = vld [vmem:[#allocation8 + $0x60] sm:$0xff] }
  0x40   :  { %517 = vmatpush3.msra.mxu0 %v100_v6  ;;  %548 = vmatpush3.msra.mxu1 %v226_v21  ;;  %v354_v61 = vld [vmem:[#allocation8 + $0x78] sm:$0xff]  ;;  %v349_v3 = vld [vmem:[#allocation8 + $0x50] sm:$0xff]  ;;  %v348_v4 = vld [vmem:[#allocation8 + $0x48] sm:$0xff] }
  0x41   :  { %518 = vmatprep.subr.mxu0 %v738_v0  ;;  %549 = vmatprep.subr.mxu1 %v738_v0  ;;  %v350_v2 = vld [vmem:[#allocation8 + $0x58] sm:$0xff]  ;;  %v347_v5 = vld [vmem:[#allocation8 + $0x40] sm:$0xff] }
  0x42   :  { %519 = vmatpush3.msra.mxu0 %v99_v7  ;;  %550 = vmatpush3.msra.mxu1 %v225_v22  ;;  %v346_v6 = vld [vmem:[#allocation8 + $0x38] sm:$0xff]  ;;  %v345_v7 = vld [vmem:[#allocation8 + $0x30] sm:$0xff] }
  0x43   :  { %520 = vmatprep.subr.mxu0 %v738_v0  ;;  %551 = vmatprep.subr.mxu1 %v738_v0 }
  0x44   :  { %521 = vmatpush3.msra.mxu0 %v98_v8  ;;  %552 = vmatpush3.msra.mxu1 %v224_v23  ;;  %v344_v8 = vld [vmem:[#allocation8 + $0x28] sm:$0xff] }
  0x45   :  { %522 = vmatprep.subr.mxu0 %v738_v0  ;;  %553 = vmatprep.subr.mxu1 %v738_v0 }
  0x46   :  { %523 = vmatpush3.msra.mxu0 %v97_v9  ;;  %554 = vmatpush3.msra.mxu1 %v223_v24  ;;  %v343_v9 = vld [vmem:[#allocation8 + $0x20] sm:$0xff] }
  0x47   :  { %524 = vmatprep.subr.mxu0 %v738_v0  ;;  %555 = vmatprep.subr.mxu1 %v738_v0 }
  0x48   :  { %525 = vmatpush3.msra.mxu0 %v96_v10  ;;  %556 = vmatpush3.msra.mxu1 %v222_v25  ;;  %v342_v10 = vld [vmem:[#allocation8 + $0x18] sm:$0xff] }
  0x49   :  { %526 = vmatprep.subr.mxu0 %v738_v0  ;;  %557 = vmatprep.subr.mxu1 %v738_v0 }
  0x4a   :  { %527 = vmatpush3.msra.mxu0 %v95_v11  ;;  %558 = vmatpush3.msra.mxu1 %v221_v26  ;;  %v341_v11 = vld [vmem:[#allocation8 + $0x10] sm:$0xff] }
  0x4b   :  { %528 = vmatprep.subr.mxu0 %v738_v0  ;;  %559 = vmatprep.subr.mxu1 %v738_v0 }
  0x4c   :  { %529 = vmatpush3.msra.mxu0 %v94_v12  ;;  %560 = vmatpush3.msra.mxu1 %v220_v27  ;;  %v340_v12 = vld [vmem:[#allocation8 + $0x8] sm:$0xff] }
  0x4d   :  { %530 = vmatprep.subr.mxu0 %v738_v0  ;;  %561 = vmatprep.subr.mxu1 %v738_v0 }
  0x4e   :  { %531 = vmatpush3.msra.mxu0 %v93_v13  ;;  %562 = vmatpush3.msra.mxu1 %v219_v28  ;;  %v339_v13 = vld [vmem:[#allocation8] sm:$0xff] }
  0x4f   :  { %532 = vmatprep.subr.mxu0 %v738_v0  ;;  %563 = vmatprep.subr.mxu1 %v738_v0 }
  0x50   :  { %533 = vmatpush3.msra.mxu0 %v92_v14  ;;  %564 = vmatpush3.msra.mxu1 %v218_v29 }
  0x51   :  { %534 = vmatprep.subr.mxu0 %v738_v0  ;;  %565 = vmatprep.subr.mxu1 %v738_v0 }
  0x52   :  { %535 = vmatpush3.msra.mxu0 %v91_v15  ;;  %566 = vmatpush3.msra.mxu1 %v217_v30 }
  0x53   :  { %536 = vmatprep.subr.mxu0 %v738_v0  ;;  %567 = vmatprep.subr.mxu1 %v738_v0 }
  0x54   :  { %537 = vmatpush3.msra.mxu0 %v90_v16  ;;  %568 = vmatpush3.msra.mxu1 %v216_v31 }
  0x55   :  { %539 = vmatmul.mubr.f32.vlgmr.msra.gmra.mxu0 %v89_v17  ;;  %576 = vmatprep.subr.mxu0 %v738_v0 }
  0x56   :  { %608 = vmatprep.mubr.msk.f32.mxu0 %vm739_vm0, %v738_v0  ;;  %569 = vmatprep.subr.mxu1 %v738_v0 }
  0x57   :  { %570 = vmatpush3.msra.mxu1 %v215_v32  ;;  %577 = vmatpush3.msra.mxu0 %v354_v61 }
  0x58   :  { %571 = vmatprep.subr.mxu1 %v738_v0  ;;  %578 = vmatprep.subr.mxu0 %v738_v0 }
  0x59   :  { %572 = vmatpush3.msra.mxu1 %v214_v33  ;;  %579 = vmatpush3.msra.mxu0 %v353_v62  ;;  %v452_v33 = vld [vmem:[%s897_s5] ss:$0 sm:$0xff]  ;;  %s740_s5 = smov [#allocation10]  }
  0x5a   :  { %580 = vmatprep.subr.mxu0 %v738_v0  ;;  %s439_s21 = sshll.u32 %s740_s5, 4  ;;  %s440_s21 = int_to_ptr.vmem [resolvable:$true] %s439_s21 }
  0x5b   :  { %581 = vmatpush3.msra.mxu0 %v352_v63  ;;  %p709_p7 = scmp.lt.s32.totalorder %s440_s21, %s440_s21 }
  0x5c   :  { %582 = vmatprep.subr.mxu0 %v738_v0 }
  0x5d   :  { %583 = vmatpush3.msra.mxu0 %v351_v1 }
  0x5e   :  { %584 = vmatprep.subr.mxu0 %v738_v0 }
  0x5f   :  { %585 = vmatpush3.msra.mxu0 %v350_v2 }
  0x60   :  { %586 = vmatprep.subr.mxu0 %v738_v0 }
  0x61   :  { %587 = vmatpush3.msra.mxu0 %v349_v3 }
  0x62   :  { %588 = vmatprep.subr.mxu0 %v738_v0 }
  0x63   :  { %589 = vmatpush3.msra.mxu0 %v348_v4 }
  0x64   :  { %590 = vmatprep.subr.mxu0 %v738_v0 }
  0x65   :  { %591 = vmatpush3.msra.mxu0 %v347_v5 }
  0x66   :  { %592 = vmatprep.subr.mxu0 %v738_v0 }
  0x67   :  { %593 = vmatpush3.msra.mxu0 %v346_v6 }
  0x68   :  { %594 = vmatprep.subr.mxu0 %v738_v0 }
  0x69   :  { %595 = vmatpush3.msra.mxu0 %v345_v7 }
  0x6a   :  { %596 = vmatprep.subr.mxu0 %v738_v0 }
  0x6b   :  { %597 = vmatpush3.msra.mxu0 %v344_v8 }
  0x6c   :  { %598 = vmatprep.subr.mxu0 %v738_v0 }
  0x6d   :  { %599 = vmatpush3.msra.mxu0 %v343_v9 }
  0x6e   :  { %600 = vmatprep.subr.mxu0 %v738_v0 }
  0x6f   :  { %601 = vmatpush3.msra.mxu0 %v342_v10 }
  0x70   :  { %602 = vmatprep.subr.mxu0 %v738_v0 }
  0x71   :  { %603 = vmatpush3.msra.mxu0 %v341_v11 }
  0x72   :  { %604 = vmatprep.subr.mxu0 %v738_v0 }
  0x73   :  { %605 = vmatpush3.msra.mxu0 %v340_v12 }
  0x74   :  { %606 = vmatprep.subr.mxu0 %v738_v0 }
  0x75   :  { %607 = vmatpush3.msra.mxu0 %v339_v13 }
 0x115   :  { %v172_v34 = vpop.f32.mrf.mxu0 }
 0x116   :  { %v178_v35 = vrot.slane %v172_v34, 4 }
 0x117   :  { %v540_v36 = vpop.f32.mrf.mxu0 }
 0x118   :  { %v179_v37 = vadd.f32 %v178_v35, %v172_v34  ;;  %v453_v35 = vld [vmem:[%s898_s6] ss:$0 sm:$0xff]  ;;  %s704_s6 = scalar_lea.vmem %s440_s21, 128 }
 0x119   :  { %p705_p6 = scmp.ne.s32.totalorder %s440_s21, %s704_s6  ;;  %p710_p8 = scmp.lt.s32.totalorder %s704_s6, %s704_s6 }
 0x11a   :  { %v180_v38 = vrot.slane %v179_v37, 2 }
 0x11b   :  { %p711_p9 = por %p710_p8, %p709_p7 }
 0x11c   :  { %v181_v39 = vadd.f32 %v180_v38, %v179_v37 }
 0x11d   :  { %p712_p10 = pnand %p711_p9, %p705_p6 }
 0x11e   :  { %v182_v40 = vrot.slane %v181_v39, 1 }
 0x120   :  { %v183_v41 = vadd.f32 %v182_v40, %v181_v39  ;;  %v337_v39 = vld [vmem:[%s899_s7] sm:$0xff] }
 0x122   :  { %v185_v42 = vmul.f32 0.125, %v183_v41 }
 0x124   :  { %v186_v43 = vsub.f32 %v172_v34, %v185_v42  ;;  %v454_v42 = vld [vmem:[%s901_s9] ss:$0 sm:$0xff] }
 0x126   :  { %v187_v44 = vmul.f32 %v186_v43, %v186_v43 }
 0x128   :  { %v188_v45 = vrot.slane %v187_v44, 4 }
 0x12a   :  { %v189_v46 = vadd.f32 %v188_v45, %v187_v44 }
 0x12c   :  { %v190_v47 = vrot.slane %v189_v46, 2 }
 0x12e   :  { %v191_v48 = vadd.f32 %v190_v47, %v189_v46 }
 0x130   :  { %v192_v49 = vrot.slane %v191_v48, 1 }
 0x132   :  { %v193_v50 = vadd.f32 %v192_v49, %v191_v48 }
 0x134   :  { %v194_v51 = vmul.f32 0.125, %v193_v50 }
 0x136   :  { %v195_v52 = vadd.f32 1e-05, %v194_v51 }
 0x138   :  { %620 = vrsqrt.f32 %v195_v52 }
 0x145   :  { %v621_v53 = vpop.eup %620 }
 0x146   :  { %v197_v55 = vmul.f32 %v621_v53, %v186_v43 }
 0x148   :  { %v204_v57 = vmul.f32 %v450_v54, %v197_v55 }
 0x14a   :  { %v211_v58 = vadd.f32 %v451_v56, %v204_v57 }
 0x14c   :  { %v212_v59 = vmul.f32 0.2, %v211_v58 }
 0x14e   :  { %v213_v60 = vmax.f32 %v211_v58, %v212_v59 }
 0x150   :  { %574 = vmatmul.mubr.f32.vlgmr.msra.gmra.mxu1 %v213_v60 }
 0x210   :  { %v296_v14 = vpop.f32.mrf.mxu1 }
 0x211   :  { %v302_v15 = vrot.slane %v296_v14, 4 }
 0x212   :  { %v575_v16 = vpop.f32.mrf.mxu1 }
 0x213   :  { %v303_v17 = vadd.f32 %v302_v15, %v296_v14 }
 0x215   :  { %v304_v18 = vrot.slane %v303_v17, 2 }
 0x217   :  { %v305_v19 = vadd.f32 %v304_v18, %v303_v17 }
 0x219   :  { %v306_v20 = vrot.slane %v305_v19, 1 }
 0x21b   :  { %v307_v21 = vadd.f32 %v306_v20, %v305_v19 }
 0x21d   :  { %v308_v22 = vmul.f32 0.125, %v307_v21 }
 0x21f   :  { %v309_v23 = vsub.f32 %v296_v14, %v308_v22 }
 0x221   :  { %v310_v24 = vmul.f32 %v309_v23, %v309_v23 }
 0x223   :  { %v311_v25 = vrot.slane %v310_v24, 4 }
 0x225   :  { %v312_v26 = vadd.f32 %v311_v25, %v310_v24 }
 0x227   :  { %v313_v27 = vrot.slane %v312_v26, 2 }
 0x229   :  { %v314_v28 = vadd.f32 %v313_v27, %v312_v26 }
 0x22b   :  { %v315_v29 = vrot.slane %v314_v28, 1 }
 0x22d   :  { %v316_v30 = vadd.f32 %v315_v29, %v314_v28 }
 0x22f   :  { %v317_v31 = vmul.f32 0.125, %v316_v30 }
 0x231   :  { %v318_v0 = vadd.f32 1e-05, %v317_v31 }
 0x233   :  { %622 = vrsqrt.f32 %v318_v0 }
 0x240   :  { %v623_v32 = vpop.eup %622 }
 0x241   :  { %v320_v34 = vmul.f32 %v623_v32, %v309_v23 }
 0x243   :  { %v327_v36 = vmul.f32 %v452_v33, %v320_v34 }
 0x245   :  { %v334_v37 = vadd.f32 %v453_v35, %v327_v36 }
 0x247   :  { %v335_v38 = vmul.f32 0.2, %v334_v37 }
 0x249   :  { %v336_v40 = vmax.f32 %v334_v37, %v335_v38 }
 0x24b   :  { %v338_v41 = vmul.f32 %v337_v39, %v336_v40 }
 0x24d   :  { %609 = vmatmul.mubr.f32.vlgmr.msra.gmra.mxu0 %v338_v41 }
 0x30d   :  { %v428_v43 = vpop.f32.mrf.mxu0 }
 0x30e   :  { %v429_v44 = vadd.f32 %v454_v42, %v428_v43 }
 0x30f   :  { %v610_v45 = vpop.f32.mrf.mxu0 }
 0x310   :  { %432 = vst [vmem:[#allocation10] sm:$0xff] %v429_v44 }
 0x311   :  { %715 = shalt.err (!%p712_p10)
}
 0x312   :  { %442 = dma.vmem_to_hbm [thread:$0]  %s440_s21, 128, %s902_s10, [#allocation4]  }
 0x313   :  { %730 = dma.done.wait [#allocation4], 128  }
 0x314   :  { %731 = vsyncadd [#allocation4], 4294967168 }
 0x315   :  { %446 = vsyncpa [#allocation3], 1 }
 0x316   :  { %447 = vsyncpa [#allocation6], 1 }
 0x317   :  { %448 = vsyncpa [#allocation9], 1 }
 0x318   :  { %449 = vsyncpa [#allocation4], 1 }

</bundles_post_ra>
